<compile_context>
chip_gen: v6e
topology: v6e:2x2x1
jax: 0.10.0
libtpu: 0.0.40
codegen_flags: <defaults>
</compile_context>

<pallas_src>
import math

import jax
import jax.numpy as jnp
from jax import lax
from jax.experimental import pallas as pl
from jax.experimental.pallas import tpu as pltpu

NEG_SLOPE = 0.01      # F.leaky_relu_ default negative slope
_INNER_CHUNK = 32     # batch rows per in-kernel sub-tile (live f32 dot result ~128 KB)


def _round_up(x, m):
    return ((x + m - 1) // m) * m


def _maxpool_agg_kernel(ft_ref, w_ref, b_ref, out_ref):
    # ft_ref : (TB*N, D_in)     f32  flattened neighbor features for TB batch rows
    # w_ref  : (D_in, D_out_p)  bf16 pre-transposed, zero-padded linear weight
    # b_ref  : (1, D_out_p)     f32  zero-padded bias
    # out_ref: (TB, D_out_p)    f32
    tb = out_ref.shape[0]
    n = ft_ref.shape[0] // tb
    d_out = w_ref.shape[1]

    chunk = math.gcd(tb, _INNER_CHUNK)     # multiple of 8 (tb is a multiple of 8)
    num_chunks = tb // chunk
    rows = chunk * n                       # matmul M-dim per sub-tile

    w = w_ref[...]                         # hoisted: resident for the whole block
    b = b_ref[...]

    def body(c, carry):
        r0 = pl.multiple_of(c * rows, rows)
        x = ft_ref[pl.ds(r0, rows), :].astype(jnp.bfloat16)        # in-kernel bf16 cast
        z = jnp.dot(x, w, preferred_element_type=jnp.float32)      # (chunk*n, d_out) f32
        m = jnp.max(z.reshape(chunk, n, d_out), axis=1)            # max over neighbors
        y = m + b                                                  # bias after max (exact)
        y = jnp.maximum(y, NEG_SLOPE * y)                          # leaky_relu (monotone)
        o0 = pl.multiple_of(c * chunk, chunk)
        out_ref[pl.ds(o0, chunk), :] = y.astype(out_ref.dtype)
        return carry

    lax.fori_loop(0, num_chunks, body, 0, unroll=True)


def max_pooling_aggregator(ft, weight, bias, *, block_b=None):
    """ft: (B, N, D_in); weight: (D_out, D_in) [torch nn.Linear layout]; bias: (D_out,)."""
    B, N, D_in = ft.shape
    D_out = weight.shape[0]
    D_out_p = _round_up(D_out, 128)        # lane-dense output width

    # Batch tile: multiple of 8 sublanes. For large B aim for >=4 grid steps
    # (pipelining + v7x megacore sharding), capped at 1024 rows so the double-buffered
    # f32 ft block stays well inside every chip's scoped-VMEM budget.
    if block_b is None:
        if B <= _INNER_CHUNK:
            TB = _round_up(B, 8)
        else:
            TB = min(1024, max(_INNER_CHUNK,
                               _round_up(pl.cdiv(B, 4), _INNER_CHUNK)))
    else:
        TB = _round_up(block_b, 8)
    grid_b = pl.cdiv(B, TB)

    # Flatten ft to 2-D (free, contiguous). No cast, no pad: the kernel reads f32
    # straight from HBM; a ragged tail block only produces garbage in output rows >= B,
    # which are sliced off (max/bias/relu are row-local, never mixed across rows).
    ft2 = ft.reshape(B * N, D_in)

    # Tiny, constant per call (folds under jit): pre-transposed bf16 weight and f32
    # bias, zero-padded to the lane-dense output width.
    w_t = jnp.zeros((D_in, D_out_p), jnp.bfloat16).at[:, :D_out].set(
        weight.T.astype(jnp.bfloat16))
    b2d = jnp.zeros((1, D_out_p), jnp.float32).at[:, :D_out].set(
        bias.astype(jnp.float32))

    # VMEM budget: double-buffered ft block (narrow D_in lane-pads to 128) + double-
    # buffered out block + generous headroom for weights/bias and in-kernel temps.
    ft_block_bytes = TB * N * _round_up(D_in, 128) * 4
    out_block_bytes = TB * D_out_p * 4
    vmem_limit = 2 * ft_block_bytes + 2 * out_block_bytes + (8 << 20)

    out = pl.pallas_call(
        _maxpool_agg_kernel,
        out_shape=jax.ShapeDtypeStruct((grid_b * TB, D_out_p), jnp.float32),
        grid_spec=pltpu.PrefetchScalarGridSpec(
            num_scalar_prefetch=0,
            grid=(grid_b,),
            in_specs=[
                pl.BlockSpec((TB * N, D_in), lambda i: (i, 0)),
                pl.BlockSpec((D_in, D_out_p), lambda i: (0, 0)),
                pl.BlockSpec((1, D_out_p), lambda i: (0, 0)),
            ],
            out_specs=pl.BlockSpec((TB, D_out_p), lambda i: (i, 0)),
        ),
        compiler_params=pltpu.CompilerParams(
            dimension_semantics=("parallel",),
            vmem_limit_bytes=int(vmem_limit)),
    )(ft2, w_t, b2d)

    return out[:B, :D_out]


def _reference(ft, weight, bias):
    # Mirrors the kernel's bf16 operand quantization; math/accumulation in f32.
    ftq = ft.astype(jnp.bfloat16).astype(jnp.float32)
    wq = weight.astype(jnp.bfloat16).astype(jnp.float32)
    y = jnp.einsum("bnd,od->bno", ftq, wq) + bias
    y = jnp.where(y > 0, y, NEG_SLOPE * y)
    return jnp.max(y, axis=1)


if __name__ == "__main__":
    key = jax.random.PRNGKey(0)
    k1, k2, k3 = jax.random.split(key, 3)

    B, N, D = 2, 8, 32          # batch, neighbors, input_dim (num_fc=1 -> Linear(D, D))
    ft = jax.random.normal(k1, (B, N, D), dtype=jnp.float32)
    weight = jax.random.normal(k2, (D, D), dtype=jnp.float32) * 0.1  # torch Linear (out, in)
    bias = jax.random.normal(k3, (D,), dtype=jnp.float32) * 0.1

    out = max_pooling_aggregator(ft, weight, bias)
    out = jax.block_until_ready(out)

    ref = _reference(ft, weight, bias)
    assert out.shape == (B, D)
    assert jnp.allclose(out, ref, atol=5e-3, rtol=5e-3), float(jnp.max(jnp.abs(out - ref)))
    print("KERNEL_OK")
</pallas_src>

<mosaic_0001>
module attributes {stable_mosaic.version = 11 : i64} {
  func.func @_maxpool_agg_kernel(%arg0: i32, %arg1: memref<64x32xf32, #tpu.memory_space<vmem>>, %arg2: memref<32x128xbf16, #tpu.memory_space<vmem>>, %arg3: memref<1x128xf32, #tpu.memory_space<vmem>>, %arg4: memref<8x128xf32, #tpu.memory_space<vmem>>) attributes {dimension_semantics = [#tpu.dimension_semantics<parallel>], iteration_bounds = array<i64: 1>, scalar_prefetch = 0 : i64, scratch_operands = 0 : i64, tpu.core_type = #tpu.core_type<tc>, window_params = [{transform_indices = @transform_0, window_bounds = array<i64: 64, 32>}, {pipeline_mode = #tpu.pipeline_mode<synchronous>, transform_indices = @transform_1, window_bounds = array<i64: 32, 128>}, {pipeline_mode = #tpu.pipeline_mode<synchronous>, transform_indices = @transform_2, window_bounds = array<i64: 1, 128>}, {transform_indices = @transform_3, window_bounds = array<i64: 8, 128>}]} {
    %c0 = arith.constant 0 : index
    %c0_0 = arith.constant 0 : index
    %0 = vector.load %arg2[%c0, %c0_0] : memref<32x128xbf16, #tpu.memory_space<vmem>>, vector<32x128xbf16>
    %c0_1 = arith.constant 0 : index
    %c0_2 = arith.constant 0 : index
    %1 = vector.load %arg3[%c0_1, %c0_2] : memref<1x128xf32, #tpu.memory_space<vmem>>, vector<1x128xf32>
    %c0_i32 = arith.constant 0 : i32
    %c64_i32 = arith.constant 64 : i32
    %2 = arith.muli %c0_i32, %c64_i32 : i32
    %3 = tpu.assume_multiple %2, 64 : i32
    %4 = arith.index_cast %3 : i32 to index
    %c0_3 = arith.constant 0 : index
    %5 = vector.load %arg1[%4, %c0_3] : memref<64x32xf32, #tpu.memory_space<vmem>>, vector<64x32xf32>
    %6 = arith.truncf %5 : vector<64x32xf32> to vector<64x32xbf16>
    %cst = arith.constant dense<0.000000e+00> : vector<64x128xf32>
    %7 = tpu.matmul %6, %0, %cst {dimension_numbers = #tpu.dot_dimension_numbers<[1], [0], [0], [1], [0, 0, 1, 1], [], []>} : vector<64x32xbf16>, vector<32x128xbf16>, vector<64x128xf32> -> vector<64x128xf32>
    %8 = vector.shape_cast %7 : vector<64x128xf32> to vector<8x8x128xf32>
    %cst_4 = arith.constant dense<0xFF800000> : vector<8x128xf32>
    %9 = vector.multi_reduction <maximumf>, %8, %cst_4 [1] : vector<8x8x128xf32> to vector<8x128xf32>
    %10 = vector.broadcast %1 : vector<1x128xf32> to vector<8x128xf32>
    %11 = arith.addf %9, %10 : vector<8x128xf32>
    %cst_5 = arith.constant 0.00999999977 : f32
    %12 = vector.broadcast %cst_5 : f32 to vector<8x128xf32>
    %13 = arith.mulf %12, %11 : vector<8x128xf32>
    %14 = arith.maximumf %11, %13 : vector<8x128xf32>
    %c8_i32 = arith.constant 8 : i32
    %15 = arith.muli %c0_i32, %c8_i32 : i32
    %16 = tpu.assume_multiple %15, 8 : i32
    %17 = arith.index_cast %16 : i32 to index
    %c0_6 = arith.constant 0 : index
    %18 = vector.load %arg4[%17, %c0_6] : memref<8x128xf32, #tpu.memory_space<vmem>>, vector<8x128xf32>
    tpu.vector_store %arg4[%17, %c0_6], %14 {strides = array<i32>} : memref<8x128xf32, #tpu.memory_space<vmem>>, vector<8x128xf32>,
    %c1_i32 = arith.constant 1 : i32
    return
  }
  func.func @transform_0(%arg0: i32) -> (i32, i32) {
    %c0_i32 = arith.constant 0 : i32
    %c0_i32_0 = arith.constant 0 : i32
    return %arg0, %c0_i32 : i32, i32
  }
  func.func @transform_1(%arg0: i32) -> (i32, i32) {
    %c0_i32 = arith.constant 0 : i32
    %c0_i32_0 = arith.constant 0 : i32
    %c0_i32_1 = arith.constant 0 : i32
    return %c0_i32, %c0_i32_0 : i32, i32
  }
  func.func @transform_2(%arg0: i32) -> (i32, i32) {
    %c0_i32 = arith.constant 0 : i32
    %c0_i32_0 = arith.constant 0 : i32
    %c0_i32_1 = arith.constant 0 : i32
    return %c0_i32, %c0_i32_0 : i32, i32
  }
  func.func @transform_3(%arg0: i32) -> (i32, i32) {
    %c0_i32 = arith.constant 0 : i32
    %c0_i32_0 = arith.constant 0 : i32
    return %arg0, %c0_i32 : i32, i32
  }
}

</mosaic_0001>

<bundles_post_ra>
// kernel: tpu_custom_call.1
= control target key start
LH: loop header
LB: loop body
LE: loop exit
PB: predicated region body
PF: predicated region fallthrough
CT: control target
= control target key end

     0   :  { %8 = vsyncpa [#allocation3], 0  ;;  %s423_s0 = inlined_call_operand.hbm [shape: f32[16,32], index: 0, kind: input, shape index: {}]   ;;  %s424_s1 = inlined_call_operand.hbm [shape: bf16[32,128], index: 1, kind: input, shape index: {}]   ;;  %s425_s2 = inlined_call_operand.vmem [shape: f32[1,128], index: 2, kind: input, shape index: {}]   ;;  %s426_s3 = inlined_call_operand.hbm [shape: f32[8,128], index: 3, kind: output, shape index: {}]  }
   0x1   :  { %9 = vsyncpa [#allocation6], 0 }
   0x2   :  { %10 = vsyncpa [#allocation4], 0 }
   0x3   :  { %15 = vsyncadd [#allocation3], 768  ;;  %s380_s12 = smov [#allocation2]  }
   0x4   :  { %s16_s13 = sshll.u32 %s380_s12, 4  ;;  %s17_s13 = int_to_ptr.vmem [resolvable:$true] %s16_s13 }
   0x5   :  { %s322_s14 = scalar_lea.vmem %s17_s13, 256  ;;  %s326_s15 = scalar_lea.vmem %s17_s13, 1024 }
   0x6   :  { %p323_p0 = scmp.ne.s32.totalorder %s17_s13, %s322_s14  ;;  %p327_p1 = scmp.lt.s32.totalorder %s17_s13, %s17_s13 }
   0x7   :  { %p328_p2 = scmp.lt.s32.totalorder %s326_s15, %s322_s14 }
   0x9   :  { %p329_p3 = por %p328_p2, %p327_p1 }
   0xb   :  { %p330_p4 = pnand %p329_p3, %p323_p0 }
   0xd   :  { %333 = shalt.err (!%p330_p4)
}
   0xe   :  { %s381_s16 = smov 128   ;;  %s382_s17 = smov 8  }
   0xf   :  { %22 = dma.hbm_to_vmem [thread:$0]  %s423_s0, 256, %s17_s13, [#allocation3], %s381_s16, %s381_s16, %s382_s17  }
  0x10   :  { %s383_s20 = smov [#allocation5]  }
  0x11   :  { %s28_s21 = sshll.u32 %s383_s20, 4  ;;  %s29_s21 = int_to_ptr.vmem [resolvable:$true] %s28_s21 }
  0x12   :  { %s342_s22 = scalar_lea.vmem %s29_s21, 256  ;;  %p347_p6 = scmp.lt.s32.totalorder %s29_s21, %s29_s21 }
  0x13   :  { %p343_p5 = scmp.ne.s32.totalorder %s29_s21, %s342_s22  ;;  %p348_p7 = scmp.lt.s32.totalorder %s342_s22, %s342_s22 }
  0x15   :  { %p349_p8 = por %p348_p7, %p347_p6 }
  0x17   :  { %p350_p9 = pnand %p349_p8, %p343_p5 }
  0x19   :  { %353 = shalt.err (!%p350_p9)
}
  0x1a   :  { %s384_s23 = smov 64   ;;  %s385_s24 = smov 4  }
  0x1b   :  { %34 = dma.hbm_to_vmem [thread:$0]  %s424_s1, 256, %s29_s21, [#allocation6], %s384_s23, %s384_s23, %s385_s24  }
  0x1c   :  { %374 = dma.done.wait [#allocation3], 1024  }
  0x1d   :  { %375 = vsyncadd [#allocation3], 4294966272 }
  0x1e   :  { %376 = dma.done.wait [#allocation6], 256  }
  0x1f   :  { %377 = vsyncadd [#allocation6], 4294967040  ;;  %v312_v0 = vld [vmem:[#allocation5 + $0x8] sm:$0xff]   ;;  %v313_v1 = vld [vmem:[#allocation5] sm:$0xff]   ;;  %vm73_vm0 = vcmask 261120   ;;  %vm238_vm1 = vcmask 1041409  }
  0x20   :  { %289 = vmatprep.subr.bf16.mxu0 %v312_v0  ;;  %301 = vmatprep.subr.bf16.mxu1 %v312_v0  ;;  %v49_v2 = vld [vmem:[#allocation2] sm:$0xff]  ;;  %v50_v3 = vld [vmem:[#allocation2 + $0x8] sm:$0xff]  ;;  %v51_v7 = vld [vmem:[#allocation2 + $0x10] sm:$0xff]  ;;  %vm241_vm2 = vcmask 1042434   ;;  %vm244_vm3 = vcmask 1043459   ;;  %vm247_vm4 = vcmask 1044484  }
  0x21   :  { %v53_v4 = vld [vmem:[#allocation2 + $0x20] sm:$0xff]  ;;  %290 = vmatpush3.bf16.msra.mxu0 %v312_v0  ;;  %303 = vmatpush3.bf16.msra.mxu1 %v312_v0  ;;  %v57_v5 = vpack.c.bf16 %v50_v3, %v49_v2  ;;  %v54_v6 = vld [vmem:[#allocation2 + $0x28] sm:$0xff]  ;;  %v52_v8 = vld [vmem:[#allocation2 + $0x18] sm:$0xff]  ;;  %vm250_vm5 = vcmask 1045509   ;;  %vm253_vm6 = vcmask 1046534   ;;  %vm256_vm7 = vcmask 1047559  }
  0x22   :  { %291 = vmatprep.subr.bf16.mxu0 %v313_v1  ;;  %302 = vmatprep.subr.bf16.mxu1 %v313_v1  ;;  %v59_v9 = vpack.c.bf16 %v54_v6, %v53_v4  ;;  %v55_v10 = vld [vmem:[#allocation2 + $0x30] sm:$0xff]  ;;  %v56_v11 = vld [vmem:[#allocation2 + $0x38] sm:$0xff]  ;;  %v58_v12 = vpack.c.bf16 %v52_v8, %v51_v7  ;;  %v282_v53 = vld [vmem:[%s425_s2] ss:$0 sm:$0xff]  ;;  %s386_s2 = smov [#allocation7]  }
  0x23   :  { %293 = vmatprep.mubr.msk.bf16.mxu0 %vm73_vm0, %v57_v5  ;;  %v60_v13 = vpack.c.bf16 %v56_v11, %v55_v10  ;;  %s266_s27 = sshll.u32 %s386_s2, 4  ;;  %s267_s27 = int_to_ptr.vmem [resolvable:$true] %s266_s27 }
  0x24   :  { %297 = vmatprep.mubr.msk.bf16.mxu1 %vm73_vm0, %v59_v9  ;;  %s354_s28 = scalar_lea.vmem %s267_s27, 128  ;;  %p359_p11 = scmp.lt.s32.totalorder %s267_s27, %s267_s27 }
  0x25   :  { %292 = vmatpush3.bf16.msra.mxu0 %v313_v1  ;;  %304 = vmatpush3.bf16.msra.mxu1 %v313_v1  ;;  %p355_p10 = scmp.ne.s32.totalorder %s267_s27, %s354_s28  ;;  %p360_p12 = scmp.lt.s32.totalorder %s354_s28, %s354_s28 }
  0x27   :  { %p361_p13 = por %p360_p12, %p359_p11 }
  0x28   :  { %294 = vmatmul.mubr.msk.bf16.vlgmr.msra.gmra.mxu0 %vm73_vm0, %v58_v12  ;;  %298 = vmatmul.mubr.msk.bf16.vlgmr.msra.gmra.mxu1 %vm73_vm0, %v60_v13 }
  0x29   :  { %p362_p0 = pnand %p361_p13, %p355_p10 }
  0xe8   :  { %v295_v14 = vpop.f32.mrf.mxu0  ;;  %v299_v15 = vpop.f32.mrf.mxu1 }
  0xe9   :  { %v163_v16 = vrot.slane %v295_v14, 4  ;;  %v187_v17 = vrot.slane %v299_v15, 4 }
  0xea   :  { %v120_v18 = vpop.f32.mrf.mxu0  ;;  %v136_v19 = vpop.f32.mrf.mxu1 }
  0xeb   :  { %v164_v20 = vmax.f32 %v295_v14, %v163_v16  ;;  %v188_v21 = vmax.f32 %v299_v15, %v187_v17  ;;  %v151_v22 = vrot.slane %v120_v18, 4  ;;  %v175_v23 = vrot.slane %v136_v19, 4 }
  0xec   :  { %v296_v24 = vpop.f32.mrf.mxu0  ;;  %v300_v25 = vpop.f32.mrf.mxu1 }
  0xed   :  { %v165_v26 = vrot.slane %v164_v20, 2  ;;  %v189_v27 = vrot.slane %v188_v21, 2  ;;  %v152_v28 = vmax.f32 %v120_v18, %v151_v22  ;;  %v176_v29 = vmax.f32 %v136_v19, %v175_v23 }
  0xee   :  { %v169_v30 = vrot.slane %v296_v24, 4  ;;  %v193_v31 = vrot.slane %v300_v25, 4  ;;  %v123_v32 = vpop.f32.mrf.mxu0  ;;  %v139_v33 = vpop.f32.mrf.mxu1 }
  0xef   :  { %v166_v34 = vmax.f32 %v164_v20, %v165_v26  ;;  %v190_v35 = vmax.f32 %v188_v21, %v189_v27  ;;  %v153_v36 = vrot.slane %v152_v28, 2  ;;  %v177_v37 = vrot.slane %v176_v29, 2 }
  0xf0   :  { %v170_v38 = vmax.f32 %v296_v24, %v169_v30  ;;  %v194_v39 = vmax.f32 %v300_v25, %v193_v31  ;;  %v157_v40 = vrot.slane %v123_v32, 4  ;;  %v181_v41 = vrot.slane %v139_v33, 4 }
  0xf1   :  { %v167_v42 = vrot.slane %v166_v34, 1  ;;  %v154_v43 = vmax.f32 %v152_v28, %v153_v36  ;;  %v178_v44 = vmax.f32 %v176_v29, %v177_v37  ;;  %v191_v50 = vrot.slane %v190_v35, 1 }
  0xf2   :  { %v171_v45 = vrot.slane %v170_v38, 2  ;;  %v195_v46 = vrot.slane %v194_v39, 2  ;;  %v158_v47 = vmax.f32 %v123_v32, %v157_v40  ;;  %v182_v48 = vmax.f32 %v139_v33, %v181_v41 }
  0xf3   :  { %v168_v49 = vmax.f32 %v166_v34, %v167_v42  ;;  %v155_v51 = vrot.slane %v154_v43, 1  ;;  %v179_v52 = vrot.slane %v178_v44, 1  ;;  %v192_v1 = vmax.f32 %v190_v35, %v191_v50 }
  0xf4   :  { %v172_v54 = vmax.f32 %v170_v38, %v171_v45  ;;  %v196_v55 = vmax.f32 %v194_v39, %v195_v46  ;;  %v159_v56 = vrot.slane %v158_v47, 2  ;;  %v183_v57 = vrot.slane %v182_v48, 2 }
  0xf5   :  { %v156_v58 = vmax.f32 %v154_v43, %v155_v51  ;;  %v180_v59 = vmax.f32 %v178_v44, %v179_v52  ;;  %v207_v0 = vadd.f32 %v282_v53, %v168_v49  ;;  %v211_v12 = vadd.f32 %v282_v53, %v192_v1 }
  0xf6   :  { %v173_v60 = vrot.slane %v172_v54, 1  ;;  %v197_v61 = vrot.slane %v196_v55, 1  ;;  %v160_v62 = vmax.f32 %v158_v47, %v159_v56  ;;  %v184_v63 = vmax.f32 %v182_v48, %v183_v57 }
  0xf7   :  { %v209_v6 = vadd.f32 %v282_v53, %v180_v59  ;;  %v205_v7 = vadd.f32 %v282_v53, %v156_v58  ;;  %v215_v11 = vmul.f32 0.01, %v207_v0  ;;  %v219_v22 = vmul.f32 0.01, %v211_v12 }
  0xf8   :  { %v174_v2 = vmax.f32 %v172_v54, %v173_v60  ;;  %v198_v3 = vmax.f32 %v196_v55, %v197_v61  ;;  %v161_v4 = vrot.slane %v160_v62, 1  ;;  %v185_v5 = vrot.slane %v184_v63, 1 }
  0xf9   :  { %v217_v17 = vmul.f32 0.01, %v209_v6  ;;  %v213_v18 = vmul.f32 0.01, %v205_v7  ;;  %v223_v21 = vmax.f32 %v207_v0, %v215_v11  ;;  %v227_v31 = vmax.f32 %v211_v12, %v219_v22 }
  0xfa   :  { %v208_v8 = vadd.f32 %v282_v53, %v174_v2  ;;  %v162_v9 = vmax.f32 %v160_v62, %v161_v4  ;;  %v186_v10 = vmax.f32 %v184_v63, %v185_v5  ;;  %v212_v14 = vadd.f32 %v282_v53, %v198_v3 }
  0xfb   :  { %v225_v26 = vmax.f32 %v209_v6, %v217_v17  ;;  %v221_v27 = vmax.f32 %v205_v7, %v213_v18  ;;  %v240_v30 = vrot.slane %v223_v21, 6  ;;  %v252_v40 = vrot.slane %v227_v31, 2 }
  0xfc   :  { %v216_v13 = vmul.f32 0.01, %v208_v8  ;;  %v206_v15 = vadd.f32 %v282_v53, %v162_v9  ;;  %v210_v16 = vadd.f32 %v282_v53, %v186_v10  ;;  %v220_v25 = vmul.f32 0.01, %v212_v14 }
  0xfd   :  { %v246_v35 = vrot.slane %v225_v26, 4 }
  0xfe   :  { %v214_v19 = vmul.f32 0.01, %v206_v15  ;;  %v218_v20 = vmul.f32 0.01, %v210_v16  ;;  %v224_v23 = vmax.f32 %v208_v8, %v216_v13  ;;  %v228_v34 = vmax.f32 %v212_v14, %v220_v25 }
 0x100   :  { %v222_v24 = vmax.f32 %v206_v15, %v214_v19  ;;  %v226_v29 = vmax.f32 %v210_v16, %v218_v20  ;;  %v243_v32 = vrot.slane %v224_v23, 5  ;;  %v255_v42 = vrot.slane %v228_v34, 1 }
 0x102   :  { %v237_v28 = vrot.slane %v222_v24, 7  ;;  %v249_v37 = vrot.slane %v226_v29, 3 }
 0x104   :  { %v239_v33 = vsel %vm238_vm1, %v237_v28, %v221_v27 }
 0x105   :  { %v242_v36 = vsel %vm241_vm2, %v240_v30, %v239_v33 }
 0x106   :  { %v245_v38 = vsel %vm244_vm3, %v243_v32, %v242_v36 }
 0x107   :  { %v248_v39 = vsel %vm247_vm4, %v246_v35, %v245_v38 }
 0x108   :  { %v251_v41 = vsel %vm250_vm5, %v249_v37, %v248_v39 }
 0x109   :  { %v254_v43 = vsel %vm253_vm6, %v252_v40, %v251_v41 }
 0x10a   :  { %v257_v44 = vsel %vm256_vm7, %v255_v42, %v254_v43 }
 0x10b   :  { %259 = vst [vmem:[#allocation7] sm:$0xff] %v257_v44 }
 0x10c   :  { %365 = shalt.err (!%p362_p0)
}
 0x10d   :  { %269 = dma.vmem_to_hbm [thread:$0]  %s267_s27, 128, %s426_s3, [#allocation4]  }
 0x10e   :  { %378 = dma.done.wait [#allocation4], 128  }
 0x10f   :  { %379 = vsyncadd [#allocation4], 4294967168 }
 0x110   :  { %273 = vsyncpa [#allocation3], 1 }
 0x111   :  { %274 = vsyncpa [#allocation6], 1 }
 0x112   :  { %275 = vsyncpa [#allocation4], 1 }

</bundles_post_ra>
